<compile_context>
chip_gen: v6e
topology: v6e:2x2x1
jax: 0.10.0
libtpu: 0.0.40
codegen_flags: <defaults>
</compile_context>

<pallas_src>
import jax
import jax.numpy as jnp
from jax.experimental import pallas as pl
from jax.experimental.pallas import tpu as pltpu

INPUT_DIM = 16      # L
C1, C2, K = 16, 32, 3
HID = 64
EPS = 1e-5          # BatchNorm1d default eps


# ---------------------------------------------------------------------------
# Pallas kernel: one batch tile (block_b rows). Everything 2-D, 3 MXU matmuls
# + 1 VPU reduction, ReLUs on the VPU. Weights are whole-array VMEM residents.
# ---------------------------------------------------------------------------
def jetcnn1d_kernel(x_ref, w1_ref, t1_ref, w2_ref, t2_ref,
                    fw1_ref, fb1_ref, fw2_ref, fb2_ref, out_ref):
    x = x_ref[...]                                                   # (TB, L)

    # conv1 + BN1 (folded into one dense affine map), then ReLU
    h1 = jnp.dot(x, w1_ref[...], preferred_element_type=jnp.float32)
    h1 = jnp.maximum(h1 + t1_ref[...], 0.0)                          # (TB, L*C1)

    # conv2 + BN2 (folded), then ReLU
    h2 = jnp.dot(h1, w2_ref[...], preferred_element_type=jnp.float32)
    h2 = jnp.maximum(h2 + t2_ref[...], 0.0)                          # (TB, L*C2)

    # fc1 (+ ReLU); fw1 columns pre-permuted to match the kernel's (l, c) order
    f1 = jnp.dot(h2, fw1_ref[...], preferred_element_type=jnp.float32)
    f1 = jnp.maximum(f1 + fb1_ref[...], 0.0)                         # (TB, HID)

    # fc2: HID -> 1 as a VPU lane-reduction (avoid an N=1 MXU matmul)
    f2 = jnp.sum(f1 * fw2_ref[...], axis=-1, keepdims=True) + fb2_ref[...]  # (TB,1)

    out_ref[...] = f2.reshape(out_ref.shape).astype(out_ref.dtype)   # (1,8,TB/8)


def jetcnn1d_forward(x, params, *, block_b=512):
    """x: (B, L) f32.  params: output of pack_params.  Returns (B,) f32."""
    assert block_b % 8 == 0
    B, L = x.shape
    W1, T1, W2, T2, fw1p, fb1, fw2, fb2 = params
    assert W1.shape[0] == L

    nb = (B + block_b - 1) // block_b
    B_pad = nb * block_b
    if B_pad != B:
        x = jnp.pad(x, ((0, B_pad - B), (0, 0)))

    def const_spec(arr):
        # Whole array, same block every grid step -> DMA'd once, stays resident.
        return pl.BlockSpec(arr.shape, lambda i: (0,) * arr.ndim)

    out = pl.pallas_call(
        jetcnn1d_kernel,
        out_shape=jax.ShapeDtypeStruct((nb, 8, block_b // 8), jnp.float32),
        grid=(nb,),
        in_specs=[
            pl.BlockSpec((block_b, L), lambda i: (i, 0)),   # batch tile of x
            const_spec(W1), const_spec(T1),
            const_spec(W2), const_spec(T2),
            const_spec(fw1p), const_spec(fb1),
            const_spec(fw2), const_spec(fb2),
        ],
        out_specs=pl.BlockSpec((1, 8, block_b // 8), lambda i: (i, 0, 0)),
        compiler_params=pltpu.CompilerParams(
            dimension_semantics=("parallel",)),              # megacore on v7x
    )(x, W1, T1, W2, T2, fw1p, fb1, fw2, fb2)

    return out.reshape(B_pad)[:B]                            # matches .squeeze(-1)


# ---------------------------------------------------------------------------
# Deterministic "torch-layout" params + packing into kernel layout.
# ---------------------------------------------------------------------------
def init_raw_params(key, input_dim):
    ks = jax.random.split(key, 16)
    f32 = jnp.float32
    w1 = jax.random.normal(ks[0], (C1, 1, K), f32) * 0.3           # conv1 weight
    b1 = jax.random.normal(ks[1], (C1,), f32) * 0.1                # conv1 bias
    g1 = 1.0 + jax.random.normal(ks[2], (C1,), f32) * 0.1          # bn1 gamma
    be1 = jax.random.normal(ks[3], (C1,), f32) * 0.1               # bn1 beta
    rm1 = jax.random.normal(ks[4], (C1,), f32) * 0.1               # bn1 running_mean
    rv1 = jax.random.uniform(ks[5], (C1,), f32, 0.5, 1.5)          # bn1 running_var
    w2 = jax.random.normal(ks[6], (C2, C1, K), f32) * 0.1          # conv2 weight
    b2 = jax.random.normal(ks[7], (C2,), f32) * 0.1
    g2 = 1.0 + jax.random.normal(ks[8], (C2,), f32) * 0.1
    be2 = jax.random.normal(ks[9], (C2,), f32) * 0.1
    rm2 = jax.random.normal(ks[10], (C2,), f32) * 0.1
    rv2 = jax.random.uniform(ks[11], (C2,), f32, 0.5, 1.5)
    fw1 = jax.random.normal(ks[12], (HID, C2 * input_dim), f32) * 0.05
    fb1 = jax.random.normal(ks[13], (HID,), f32) * 0.1
    fw2 = jax.random.normal(ks[14], (1, HID), f32) * 0.1
    fb2 = jax.random.normal(ks[15], (1,), f32) * 0.1
    return (w1, b1, g1, be1, rm1, rv1, w2, b2, g2, be2, rm2, rv2,
            fw1, fb1, fw2, fb2)


def pack_params(raw, L):
    (w1, b1, g1, be1, rm1, rv1, w2, b2, g2, be2, rm2, rv2,
     fw1, fb1, fw2, fb2) = raw
    f32 = jnp.float32

    # Fold BatchNorm (inference, running stats) + conv bias into scale/shift.
    s1 = g1 / jnp.sqrt(rv1 + EPS)
    sh1 = be1 - rm1 * s1 + b1 * s1          # per-channel shift, conv bias folded
    s2 = g2 / jnp.sqrt(rv2 + EPS)
    sh2 = be2 - rm2 * s2 + b2 * s2

    # conv1(1->C1, k=3, pad=1) + BN1 as one dense (L, L*C1) matrix.
    # W1[j, l*C1+co] = w1[co,0,k]*s1[co]  where j = l + k - 1 (zero outside).
    w1s = w1[:, 0, :] * s1[:, None]                                # (C1, K)
    W1 = sum(jnp.kron(jnp.eye(L, k=1 - k, dtype=f32), w1s[:, k][None, :])
             for k in range(K))                                    # (L, L*C1)
    T1 = jnp.tile(sh1, L)[None, :]                                 # (1, L*C1)

    # conv2(C1->C2, k=3, pad=1) + BN2 as one dense (L*C1, L*C2) matrix.
    # W2[lp*C1+ci, l*C2+co] = w2[co,ci,k]*s2[co]  where lp = l + k - 1.
    w2s = w2 * s2[:, None, None]                                   # (C2, C1, K)
    W2 = sum(jnp.kron(jnp.eye(L, k=1 - k, dtype=f32), w2s[:, :, k].T)
             for k in range(K))                                    # (L*C1, L*C2)
    T2 = jnp.tile(sh2, L)[None, :]                                 # (1, L*C2)

    # fc1: torch flatten index is c*L + l; kernel flatten index is l*C2 + c.
    fw1p = jnp.transpose(fw1.reshape(HID, C2, L), (2, 1, 0)).reshape(L * C2, HID)

    return (W1, T1, W2, T2,
            fw1p, fb1[None, :],          # (1, HID)
            fw2,                         # (1, HID) row for the lane reduction
            fb2.reshape(1, 1))           # (1, 1)


# Pure-JAX reference mirroring the torch module (eval mode), for validation.
def jetcnn1d_ref(x, raw):
    (w1, b1, g1, be1, rm1, rv1, w2, b2, g2, be2, rm2, rv2,
     fw1, fb1, fw2, fb2) = raw
    dn = ('NCH', 'OIH', 'NCH')
    h = x[:, None, :]                                              # (B, 1, L)
    h = jax.lax.conv_general_dilated(h, w1, (1,), [(1, 1)], dimension_numbers=dn)
    h = h + b1[None, :, None]
    h = (h - rm1[None, :, None]) / jnp.sqrt(rv1[None, :, None] + EPS) \
        * g1[None, :, None] + be1[None, :, None]
    h = jnp.maximum(h, 0.0)
    h = jax.lax.conv_general_dilated(h, w2, (1,), [(1, 1)], dimension_numbers=dn)
    h = h + b2[None, :, None]
    h = (h - rm2[None, :, None]) / jnp.sqrt(rv2[None, :, None] + EPS) \
        * g2[None, :, None] + be2[None, :, None]
    h = jnp.maximum(h, 0.0)
    flat = h.reshape(h.shape[0], -1)                               # channel-major
    f1 = jnp.maximum(flat @ fw1.T + fb1, 0.0)
    return (f1 @ fw2.T + fb2)[:, 0]
    # TODO(synk): Dropout layers are identity in eval mode and are not modeled.


if __name__ == "__main__":
    key = jax.random.PRNGKey(0)
    kx, kp = jax.random.split(key)
    B = 200                                   # small test batch (pads to 4 blocks)
    x = jax.random.normal(kx, (B, INPUT_DIM), jnp.float32)

    raw = init_raw_params(kp, INPUT_DIM)
    params = pack_params(raw, INPUT_DIM)

    # Small block for the test; use block_b>=512 (v5e/v6e) / <=1024 (v7x 64MiB
    # VMEM) for real batches.
    out = jetcnn1d_forward(x, params, block_b=64)
    out = jax.block_until_ready(out)

    ref = jetcnn1d_ref(x, raw)
    assert out.shape == (B,)
    assert jnp.allclose(out, ref, atol=2e-3, rtol=2e-3), (out, ref)
    print("KERNEL_OK")
</pallas_src>

<mosaic_0001>
module attributes {stable_mosaic.version = 11 : i64} {
  func.func @jetcnn1d_kernel(%arg0: i32, %arg1: memref<64x16xf32, #tpu.memory_space<vmem>>, %arg2: memref<16x256xf32, #tpu.memory_space<vmem>>, %arg3: memref<1x256xf32, #tpu.memory_space<vmem>>, %arg4: memref<256x512xf32, #tpu.memory_space<vmem>>, %arg5: memref<1x512xf32, #tpu.memory_space<vmem>>, %arg6: memref<512x64xf32, #tpu.memory_space<vmem>>, %arg7: memref<1x64xf32, #tpu.memory_space<vmem>>, %arg8: memref<1x64xf32, #tpu.memory_space<vmem>>, %arg9: memref<1x1xf32, #tpu.memory_space<vmem>>, %arg10: memref<1x8x8xf32, #tpu.memory_space<vmem>>) attributes {dimension_semantics = [#tpu.dimension_semantics<parallel>], iteration_bounds = array<i64: 4>, scalar_prefetch = 0 : i64, scratch_operands = 0 : i64, tpu.core_type = #tpu.core_type<tc>, window_params = [{transform_indices = @transform_0, window_bounds = array<i64: 64, 16>}, {pipeline_mode = #tpu.pipeline_mode<synchronous>, transform_indices = @transform_1, window_bounds = array<i64: 16, 256>}, {pipeline_mode = #tpu.pipeline_mode<synchronous>, transform_indices = @transform_2, window_bounds = array<i64: 1, 256>}, {pipeline_mode = #tpu.pipeline_mode<synchronous>, transform_indices = @transform_3, window_bounds = array<i64: 256, 512>}, {pipeline_mode = #tpu.pipeline_mode<synchronous>, transform_indices = @transform_4, window_bounds = array<i64: 1, 512>}, {pipeline_mode = #tpu.pipeline_mode<synchronous>, transform_indices = @transform_5, window_bounds = array<i64: 512, 64>}, {pipeline_mode = #tpu.pipeline_mode<synchronous>, transform_indices = @transform_6, window_bounds = array<i64: 1, 64>}, {pipeline_mode = #tpu.pipeline_mode<synchronous>, transform_indices = @transform_7, window_bounds = array<i64: 1, 64>}, {pipeline_mode = #tpu.pipeline_mode<synchronous>, transform_indices = @transform_8, window_bounds = array<i64: 1, 1>}, {transform_indices = @transform_9, window_bounds = array<i64: 1, 8, 8>}]} {
    %c0 = arith.constant 0 : index
    %c0_0 = arith.constant 0 : index
    %0 = vector.load %arg1[%c0, %c0_0] : memref<64x16xf32, #tpu.memory_space<vmem>>, vector<64x16xf32>
    %c0_1 = arith.constant 0 : index
    %c0_2 = arith.constant 0 : index
    %1 = vector.load %arg2[%c0_1, %c0_2] : memref<16x256xf32, #tpu.memory_space<vmem>>, vector<16x256xf32>
    %cst = arith.constant dense<0.000000e+00> : vector<64x256xf32>
    %2 = tpu.matmul %0, %1, %cst {dimension_numbers = #tpu.dot_dimension_numbers<[1], [0], [0], [1], [0, 0, 1, 1], [], []>} : vector<64x16xf32>, vector<16x256xf32>, vector<64x256xf32> -> vector<64x256xf32>
    %c0_3 = arith.constant 0 : index
    %c0_4 = arith.constant 0 : index
    %3 = vector.load %arg3[%c0_3, %c0_4] : memref<1x256xf32, #tpu.memory_space<vmem>>, vector<1x256xf32>
    %4 = vector.broadcast %3 : vector<1x256xf32> to vector<64x256xf32>
    %5 = arith.addf %2, %4 : vector<64x256xf32>
    %cst_5 = arith.constant 0.000000e+00 : f32
    %6 = vector.broadcast %cst_5 : f32 to vector<64x256xf32>
    %7 = arith.maximumf %5, %6 : vector<64x256xf32>
    %c0_6 = arith.constant 0 : index
    %c0_7 = arith.constant 0 : index
    %8 = vector.load %arg4[%c0_6, %c0_7] : memref<256x512xf32, #tpu.memory_space<vmem>>, vector<256x512xf32>
    %cst_8 = arith.constant dense<0.000000e+00> : vector<64x512xf32>
    %9 = tpu.matmul %7, %8, %cst_8 {dimension_numbers = #tpu.dot_dimension_numbers<[1], [0], [0], [1], [0, 0, 1, 1], [], []>} : vector<64x256xf32>, vector<256x512xf32>, vector<64x512xf32> -> vector<64x512xf32>
    %c0_9 = arith.constant 0 : index
    %c0_10 = arith.constant 0 : index
    %10 = vector.load %arg5[%c0_9, %c0_10] : memref<1x512xf32, #tpu.memory_space<vmem>>, vector<1x512xf32>
    %11 = vector.broadcast %10 : vector<1x512xf32> to vector<64x512xf32>
    %12 = arith.addf %9, %11 : vector<64x512xf32>
    %cst_11 = arith.constant 0.000000e+00 : f32
    %13 = vector.broadcast %cst_11 : f32 to vector<64x512xf32>
    %14 = arith.maximumf %12, %13 : vector<64x512xf32>
    %c0_12 = arith.constant 0 : index
    %c0_13 = arith.constant 0 : index
    %15 = vector.load %arg6[%c0_12, %c0_13] : memref<512x64xf32, #tpu.memory_space<vmem>>, vector<512x64xf32>
    %cst_14 = arith.constant dense<0.000000e+00> : vector<64x64xf32>
    %16 = tpu.matmul %14, %15, %cst_14 {dimension_numbers = #tpu.dot_dimension_numbers<[1], [0], [0], [1], [0, 0, 1, 1], [], []>} : vector<64x512xf32>, vector<512x64xf32>, vector<64x64xf32> -> vector<64x64xf32>
    %c0_15 = arith.constant 0 : index
    %c0_16 = arith.constant 0 : index
    %17 = vector.load %arg7[%c0_15, %c0_16] : memref<1x64xf32, #tpu.memory_space<vmem>>, vector<1x64xf32>
    %18 = vector.broadcast %17 : vector<1x64xf32> to vector<64x64xf32>
    %19 = arith.addf %16, %18 : vector<64x64xf32>
    %cst_17 = arith.constant 0.000000e+00 : f32
    %20 = vector.broadcast %cst_17 : f32 to vector<64x64xf32>
    %21 = arith.maximumf %19, %20 : vector<64x64xf32>
    %c0_18 = arith.constant 0 : index
    %c0_19 = arith.constant 0 : index
    %22 = vector.load %arg8[%c0_18, %c0_19] : memref<1x64xf32, #tpu.memory_space<vmem>>, vector<1x64xf32>
    %23 = vector.broadcast %22 : vector<1x64xf32> to vector<64x64xf32>
    %24 = arith.mulf %21, %23 : vector<64x64xf32>
    %cst_20 = arith.constant dense<0.000000e+00> : vector<64xf32>
    %25 = vector.multi_reduction <add>, %24, %cst_20 [1] : vector<64x64xf32> to vector<64xf32>
    %26 = vector.shape_cast %25 : vector<64xf32> to vector<64x1xf32>
    %c0_21 = arith.constant 0 : index
    %c0_22 = arith.constant 0 : index
    %27 = vector.load %arg9[%c0_21, %c0_22] : memref<1x1xf32, #tpu.memory_space<vmem>>, vector<1x1xf32>
    %28 = vector.broadcast %27 : vector<1x1xf32> to vector<64x1xf32>
    %29 = arith.addf %26, %28 : vector<64x1xf32>
    %30 = vector.shape_cast %29 : vector<64x1xf32> to vector<1x8x8xf32>
    %c0_23 = arith.constant 0 : index
    %c0_24 = arith.constant 0 : index
    %c0_25 = arith.constant 0 : index
    %31 = vector.load %arg10[%c0_23, %c0_24, %c0_25] : memref<1x8x8xf32, #tpu.memory_space<vmem>>, vector<1x8x8xf32>
    tpu.vector_store %arg10[%c0_23, %c0_24, %c0_25], %30 {strides = array<i32>} : memref<1x8x8xf32, #tpu.memory_space<vmem>>, vector<1x8x8xf32>,
    return
  }
  func.func @transform_0(%arg0: i32) -> (i32, i32) {
    %c0_i32 = arith.constant 0 : i32
    %c0_i32_0 = arith.constant 0 : i32
    return %arg0, %c0_i32 : i32, i32
  }
  func.func @transform_1(%arg0: i32) -> (i32, i32) {
    %c0_i32 = arith.constant 0 : i32
    %c0_i32_0 = arith.constant 0 : i32
    %c0_i32_1 = arith.constant 0 : i32
    return %c0_i32, %c0_i32_0 : i32, i32
  }
  func.func @transform_2(%arg0: i32) -> (i32, i32) {
    %c0_i32 = arith.constant 0 : i32
    %c0_i32_0 = arith.constant 0 : i32
    %c0_i32_1 = arith.constant 0 : i32
    return %c0_i32, %c0_i32_0 : i32, i32
  }
  func.func @transform_3(%arg0: i32) -> (i32, i32) {
    %c0_i32 = arith.constant 0 : i32
    %c0_i32_0 = arith.constant 0 : i32
    %c0_i32_1 = arith.constant 0 : i32
    return %c0_i32, %c0_i32_0 : i32, i32
  }
  func.func @transform_4(%arg0: i32) -> (i32, i32) {
    %c0_i32 = arith.constant 0 : i32
    %c0_i32_0 = arith.constant 0 : i32
    %c0_i32_1 = arith.constant 0 : i32
    return %c0_i32, %c0_i32_0 : i32, i32
  }
  func.func @transform_5(%arg0: i32) -> (i32, i32) {
    %c0_i32 = arith.constant 0 : i32
    %c0_i32_0 = arith.constant 0 : i32
    %c0_i32_1 = arith.constant 0 : i32
    return %c0_i32, %c0_i32_0 : i32, i32
  }
  func.func @transform_6(%arg0: i32) -> (i32, i32) {
    %c0_i32 = arith.constant 0 : i32
    %c0_i32_0 = arith.constant 0 : i32
    %c0_i32_1 = arith.constant 0 : i32
    return %c0_i32, %c0_i32_0 : i32, i32
  }
  func.func @transform_7(%arg0: i32) -> (i32, i32) {
    %c0_i32 = arith.constant 0 : i32
    %c0_i32_0 = arith.constant 0 : i32
    %c0_i32_1 = arith.constant 0 : i32
    return %c0_i32, %c0_i32_0 : i32, i32
  }
  func.func @transform_8(%arg0: i32) -> (i32, i32) {
    %c0_i32 = arith.constant 0 : i32
    %c0_i32_0 = arith.constant 0 : i32
    %c0_i32_1 = arith.constant 0 : i32
    return %c0_i32, %c0_i32_0 : i32, i32
  }
  func.func @transform_9(%arg0: i32) -> (i32, i32, i32) {
    %c0_i32 = arith.constant 0 : i32
    %c0_i32_0 = arith.constant 0 : i32
    %c0_i32_1 = arith.constant 0 : i32
    return %arg0, %c0_i32, %c0_i32_0 : i32, i32, i32
  }
}

</mosaic_0001>

<bundles_post_ra>
// kernel: tpu_custom_call.1
= control target key start
LH: loop header
LB: loop body
LE: loop exit
PB: predicated region body
PF: predicated region fallthrough
CT: control target
= control target key end

     0   :  { %s2546_s0 = inlined_call_operand.vmem [shape: f32[256,16], index: 0, kind: input, shape index: {}]   ;;  %s2547_s1 = inlined_call_operand.vmem [shape: f32[16,256], index: 1, kind: input, shape index: {}]   ;;  %s2548_s2 = inlined_call_operand.vmem [shape: f32[1,256], index: 2, kind: input, shape index: {}]   ;;  %s2549_s3 = inlined_call_operand.vmem [shape: f32[256,512], index: 3, kind: input, shape index: {}]   ;;  %s2550_s4 = inlined_call_operand.vmem [shape: f32[1,512], index: 4, kind: input, shape index: {}]   ;;  %s2551_s5 = inlined_call_operand.vmem [shape: f32[512,64], index: 5, kind: input, shape index: {}]   ;;  %s2552_s6 = inlined_call_operand.vmem [shape: f32[1,64], index: 6, kind: input, shape index: {}]   ;;  %s2553_s7 = inlined_call_operand.vmem [shape: f32[1,64], index: 7, kind: input, shape index: {}]   ;;  %s2554_s8 = inlined_call_operand.<no memory space> [shape: f32[1,1], index: 8, kind: input, shape index: {}]   ;;  %s2555_s9 = inlined_call_operand.hbm [shape: f32[4,8,8], index: 9, kind: output, shape index: {}]  }
   0x1   :  { %v14_v0 = vstv %s2554_s8 }
   0x2   :  { %15 = vst [vmem:[#allocation2] sm:$0x1] %v14_v0 }
   0x3   :  { %16 = vsyncpa [#allocation4], 0 }
   0x4   :  { %18 = vsyncpa [#allocation4 + $0x1], 0  ;;  %s1716_s11 = smov 0   ;;  %s1718_s12 = smov 0  }
   0x5   :  { %s1720_s13 = smov 0   ;;  %s1722_s14 = smov 0  }
   0x6 LB: > { %s1737_s8 = sadd.s32 4294967295, %s1658_s14   ;;  %s1421_s15 = sadd.s32 4294967294, %s1658_s14   ;;  %s1658_s14 = sphi %s1722_s14, %s2561_s14   ;;  %s1654_s13 = sphi %s1720_s13, %s2560_s13   ;;  %s1650_s12 = sphi %s1718_s12, %s2559_s12   ;;  %s1646_s11 = sphi %s1716_s11, %s2558_s11  }
   0x7   : > { %s1741_s16 = sadd.s32 1, %s1658_s14   ;;  %s225_s17 = sadd.s32 1, %s1654_s13 }
   0x8   : > { %s222_s18 = ssub.s32 %s1658_s14, %s1741_s16  ;;  %p235_p0 = scmp.ne.s32.totalorder %s1654_s13, %s1650_s12 }
   0x9   : > { %p223_p1 = scmp.eq.s32.totalorder %s222_s18, 0  ;;  %p236_p2 = scmp.eq.s32.totalorder %s1737_s8, 3 }
   0xa   : > { %p241_p3 = scmp.ne.s32.totalorder %s1650_s12, %s1646_s11  ;;  %p242_p4 = scmp.eq.s32.totalorder %s1421_s15, 3 }
   0xb   : > { %s1752_s19 = scalar_select %p223_p1, %s1654_s13, %s225_s17  }
   0xc   : > { %p1754_p5 = por %p236_p2, %p235_p0  ;;  %p1758_p6 = por %p242_p4, %p241_p3 }
   0xd   : > { %p1424_p7 = scmp.ge.s32.totalorder %s1658_s14, 1  ;;  %p293_p8 = scmp.lt.s32.totalorder %s1658_s14, 5 }
   0xf   : > { %p294_p9 = pnand %p1424_p7, %p293_p8 }
  0x10   : > { %s1426_s28 = sshll.u32 (!%p294_p9), %s1737_s8, 3 }
  0x11   : > { %297 = sbr.rel (%p294_p9) target bundleno = 943 (0x3af), region = 56  ;;  %p330_p10 = scmp.lt.s32.totalorder (!%p294_p9), %s1426_s28, 31 }
  0x16   : > { %v346_v1 = vld [vmem:[%s2547_s1 + $0x18] sm:$0xff]  ;;  %v345_v2 = vld [vmem:[%s2547_s1 + $0x10] sm:$0xff]  ;;  %v344_v3 = vld [vmem:[%s2547_s1 + $0x8] sm:$0xff]  ;;  %v1660_v5 = vmov 0.0   ;;  %s2563_s28 = smov (!%p330_p10, %s1426_s28), 31  ;;  %vm359_vm0 = vcmask 130048  }
  0x17   : > { %412 = vmatprep.subr.mxu0 %v346_v1  ;;  %v343_v4 = vld [vmem:[%s2547_s1] sm:$0xff]  ;;  %448 = vmatprep.mubr.f32.mxu0 %v1660_v5  ;;  %v574_v6 = vld [vmem:[%s2549_s3 + $0x1e8] sm:$0xff]  ;;  %v576_v7 = vld [vmem:[%s2549_s3 + $0x1f8] sm:$0xff]  ;;  %s1427_s17 = sshll.u32 %s2563_s28, 3  ;;  %vm1225_vm1 = vcmask 523264   ;;  %vm1331_vm2 = vcmask 1041409  }
  0x18   : > { %413 = vmatpush1.msra.mxu0 %v345_v2  ;;  %663 = vmatprep.subr.mxu1 %v574_v6  ;;  %v573_v8 = vld [vmem:[%s2549_s3 + $0x1e0] sm:$0xff]  ;;  %v570_v9 = vld [vmem:[%s2549_s3 + $0x1c8] sm:$0xff]  ;;  %s1805_s25 = scalar_lea.vmem %s2546_s0, %s1427_s17  ;;  %v575_v14 = vld [vmem:[%s2549_s3 + $0x1f0] sm:$0xff]  ;;  %vm1333_vm3 = vcmask 1042434   ;;  %vm1335_vm4 = vcmask 1043459   ;;  %vm1337_vm5 = vcmask 1044484  }
  0x19   : > { %414 = vmatprep.subr.mxu0 %v344_v3  ;;  %664 = vmatpush1.msra.mxu1 %v573_v8  ;;  %v569_v10 = vld [vmem:[%s2549_s3 + $0x1c0] sm:$0xff]  ;;  %v566_v11 = vld [vmem:[%s2549_s3 + $0x1a8] sm:$0xff]  ;;  %v572_v16 = vld [vmem:[%s2549_s3 + $0x1d8] sm:$0xff]  ;;  %vm1339_vm6 = vcmask 1045509   ;;  %vm1341_vm7 = vcmask 1046534   ;;  %s1440_s17 = sshll.u32 %s1737_s8, 7 }
  0x1a   : > { %415 = vmatpush1.msra.mxu0 %v343_v4  ;;  %665 = vmatprep.subr.mxu1 %v570_v9  ;;  %v565_v12 = vld [vmem:[%s2549_s3 + $0x1a0] sm:$0xff]  ;;  %v562_v13 = vld [vmem:[%s2549_s3 + $0x188] sm:$0xff]  ;;  %v571_v18 = vld [vmem:[%s2549_s3 + $0x1d0] sm:$0xff]  ;;  %vm1343_vm8 = vcmask 1047559   ;;  %vm1346_vm9 = vcmask 64512   ;;  %s2509_s26 = scalar_lea.hbm %s2555_s9, %s1440_s17  ;;  %s1662_s28 = smov [#allocation3]  }
  0x1b   : > { %776 = vmatprep.subr.mxu0 %v576_v7  ;;  %666 = vmatpush1.msra.mxu1 %v569_v10  ;;  %v335_v15 = vld [vmem:[%s1805_s25] sm:$0xff]  ;;  %v558_v19 = vld [vmem:[%s2549_s3 + $0x168] sm:$0xff]  ;;  %v568_v21 = vld [vmem:[%s2549_s3 + $0x1b8] sm:$0xff]  ;;  %s1602_s29 = sshll.u32 %s1662_s28, 4  ;;  %s1603_s29 = int_to_ptr.vmem [resolvable:$false] %s1602_s29 }
  0x1c   : > { %667 = vmatprep.subr.mxu1 %v566_v11  ;;  %v561_v17 = vld [vmem:[%s2549_s3 + $0x180] sm:$0xff]  ;;  %1428 = vmatmul.mubr.msk.f32.vlgmr.msra.gmra.mxu0 %vm359_vm0, %v335_v15  ;;  %v336_v20 = vld [vmem:[%s1805_s25 + $0x8] sm:$0xff]  ;;  %v567_v22 = vld [vmem:[%s2549_s3 + $0x1b0] sm:$0xff]  ;;  %s1604_s30 = scalar_lea.vmem %s1603_s29, 256 }
  0x1d   : > { %668 = vmatpush1.msra.mxu1 %v565_v12  ;;  %454 = vmatprep.mubr.f32.mxu0 %v1660_v5  ;;  %v564_v23 = vld [vmem:[%s2549_s3 + $0x198] sm:$0xff]  ;;  %v557_v24 = vld [vmem:[%s2549_s3 + $0x160] sm:$0xff]  ;;  %v563_v25 = vld [vmem:[%s2549_s3 + $0x190] sm:$0xff] }
  0x1e   : > { %669 = vmatprep.subr.mxu1 %v562_v13  ;;  %777 = vmatpush1.msra.mxu0 %v575_v14  ;;  %v554_v26 = vld [vmem:[%s2549_s3 + $0x148] sm:$0xff]  ;;  %v337_v27 = vld [vmem:[%s1805_s25 + $0x10] sm:$0xff]  ;;  %v560_v28 = vld [vmem:[%s2549_s3 + $0x178] sm:$0xff] }
  0x1f   : > { %778 = vmatprep.subr.mxu0 %v572_v16  ;;  %670 = vmatpush1.msra.mxu1 %v561_v17  ;;  %v559_v29 = vld [vmem:[%s2549_s3 + $0x170] sm:$0xff]  ;;  %v556_v30 = vld [vmem:[%s2549_s3 + $0x158] sm:$0xff]  ;;  %v553_v31 = vld [vmem:[%s2549_s3 + $0x140] sm:$0xff] }
  0x20   : > { %779 = vmatpush1.msra.mxu0 %v571_v18  ;;  %671 = vmatprep.subr.mxu1 %v558_v19  ;;  %v555_v32 = vld [vmem:[%s2549_s3 + $0x150] sm:$0xff]  ;;  %v550_v33 = vld [vmem:[%s2549_s3 + $0x128] sm:$0xff]  ;;  %v338_v34 = vld [vmem:[%s1805_s25 + $0x18] sm:$0xff] }
  0x21   : > { %1429 = vmatmul.mubr.msk.f32.gmra.mxu0 %vm359_vm0, %v336_v20  ;;  %780 = vmatprep.subr.mxu0 %v568_v21  ;;  %v552_v35 = vld [vmem:[%s2549_s3 + $0x138] sm:$0xff]  ;;  %v549_v36 = vld [vmem:[%s2549_s3 + $0x120] sm:$0xff]  ;;  %v551_v37 = vld [vmem:[%s2549_s3 + $0x130] sm:$0xff] }
  0x22   : > { %460 = vmatprep.mubr.f32.mxu0 %v1660_v5  ;;  %781 = vmatpush1.msra.mxu0 %v567_v22  ;;  %v546_v38 = vld [vmem:[%s2549_s3 + $0x108] sm:$0xff]  ;;  %v548_v39 = vld [vmem:[%s2549_s3 + $0x118] sm:$0xff]  ;;  %v545_v40 = vld [vmem:[%s2549_s3 + $0x100] sm:$0xff] }
  0x23   : > { %782 = vmatprep.subr.mxu0 %v564_v23  ;;  %672 = vmatpush1.msra.mxu1 %v557_v24  ;;  %v339_v41 = vld [vmem:[%s1805_s25 + $0x20] sm:$0xff]  ;;  %v542_v42 = vld [vmem:[%s2549_s3 + $0xe8] sm:$0xff]  ;;  %v547_v43 = vld [vmem:[%s2549_s3 + $0x110] sm:$0xff] }
  0x24   : > { %783 = vmatpush1.msra.mxu0 %v563_v25  ;;  %673 = vmatprep.subr.mxu1 %v554_v26  ;;  %v544_v44 = vld [vmem:[%s2549_s3 + $0xf8] sm:$0xff]  ;;  %v541_v45 = vld [vmem:[%s2549_s3 + $0xe0] sm:$0xff]  ;;  %v543_v46 = vld [vmem:[%s2549_s3 + $0xf0] sm:$0xff] }
  0x25   : > { %1430 = vmatmul.mubr.msk.f32.gmra.mxu0 %vm359_vm0, %v337_v27  ;;  %784 = vmatprep.subr.mxu0 %v560_v28  ;;  %v538_v47 = vld [vmem:[%s2549_s3 + $0xc8] sm:$0xff]  ;;  %v540_v49 = vld [vmem:[%s2549_s3 + $0xd8] sm:$0xff]  ;;  %v537_v50 = vld [vmem:[%s2549_s3 + $0xc0] sm:$0xff] }
  0x26   : > { %466 = vmatprep.mubr.f32.mxu0 %v1660_v5  ;;  %785 = vmatpush1.msra.mxu0 %v559_v29  ;;  %v340_v48 = vld [vmem:[%s1805_s25 + $0x28] sm:$0xff]  ;;  %v539_v51 = vld [vmem:[%s2549_s3 + $0xd0] sm:$0xff]  ;;  %v536_v53 = vld [vmem:[%s2549_s3 + $0xb8] sm:$0xff] }
  0x27   : > { %786 = vmatprep.subr.mxu0 %v556_v30  ;;  %674 = vmatpush1.msra.mxu1 %v553_v31  ;;  %v534_v52 = vld [vmem:[%s2549_s3 + $0xa8] sm:$0xff]  ;;  %v533_v54 = vld [vmem:[%s2549_s3 + $0xa0] sm:$0xff]  ;;  %v341_v55 = vld [vmem:[%s1805_s25 + $0x30] sm:$0xff] }
  0x28   : > { %787 = vmatpush1.msra.mxu0 %v555_v32  ;;  %675 = vmatprep.subr.mxu1 %v550_v33  ;;  %v530_v56 = vld [vmem:[%s2549_s3 + $0x88] sm:$0xff]  ;;  %v535_v57 = vld [vmem:[%s2549_s3 + $0xb0] sm:$0xff]  ;;  %v532_v58 = vld [vmem:[%s2549_s3 + $0x98] sm:$0xff] }
  0x29   : > { %1431 = vmatmul.mubr.msk.f32.gmra.mxu0 %vm359_vm0, %v338_v34  ;;  %788 = vmatprep.subr.mxu0 %v552_v35  ;;  %v529_v59 = vld [vmem:[%s2549_s3 + $0x80] sm:$0xff]  ;;  %v531_v60 = vld [vmem:[%s2549_s3 + $0x90] sm:$0xff]  ;;  %v526_v61 = vld [vmem:[%s2549_s3 + $0x68] sm:$0xff] }
  0x2a   : > { %472 = vmatprep.mubr.f32.mxu0 %v1660_v5  ;;  %676 = vmatpush1.msra.mxu1 %v549_v36  ;;  %v342_v62 = vld [vmem:[%s1805_s25 + $0x38] sm:$0xff]  ;;  %v525_v0 = vld [vmem:[%s2549_s3 + $0x60] sm:$0xff]  ;;  %v527_v1 = vld [vmem:[%s2549_s3 + $0x70] sm:$0xff]  ;;  %s326_s25 = sand.u32 1, %s1650_s12  }
  0x2b   : > { %789 = vmatpush1.msra.mxu0 %v551_v37  ;;  %677 = vmatprep.subr.mxu1 %v546_v38  ;;  %v528_v63 = vld [vmem:[%s2549_s3 + $0x78] sm:$0xff]  ;;  %v522_v2 = vld [vmem:[%s2549_s3 + $0x48] sm:$0xff]  ;;  %v521_v4 = vld [vmem:[%s2549_s3 + $0x40] sm:$0xff]  ;;  %s2502_s15 = sshll.u32 %s326_s25, 3  ;;  %s1349_s8 = scalar_lea.sflag [#allocation4], %s326_s25 }
  0x2c   : > { %790 = vmatprep.subr.mxu0 %v548_v39  ;;  %678 = vmatpush1.msra.mxu1 %v545_v40  ;;  %v524_v3 = vld [vmem:[%s2549_s3 + $0x58] sm:$0xff]  ;;  %v518_v6 = vld [vmem:[%s2549_s3 + $0x28] sm:$0xff]  ;;  %v517_v8 = vld [vmem:[%s2549_s3 + $0x20] sm:$0xff]  ;;  %s328_s18 = scalar_lea.vmem [#allocation3], %s2502_s15 }
  0x2d   : > { %1432 = vmatmul.mubr.msk.f32.gmra.mxu0 %vm359_vm0, %v339_v41  ;;  %679 = vmatprep.subr.mxu1 %v542_v42  ;;  %v520_v7 = vld [vmem:[%s2549_s3 + $0x38] sm:$0xff]  ;;  %v519_v9 = vld [vmem:[%s2549_s3 + $0x30] sm:$0xff]  ;;  %v514_v10 = vld [vmem:[%s2549_s3 + $0x8] sm:$0xff]  ;;  %s1362_s22 = sshll.u32 %s328_s18, 4  ;;  %s1363_s22 = int_to_ptr.vmem [resolvable:$true] %s1362_s22 }
  0x2e   : > { %478 = vmatprep.mubr.f32.mxu0 %v1660_v5  ;;  %791 = vmatpush1.msra.mxu0 %v547_v43  ;;  %v516_v11 = vld [vmem:[%s2549_s3 + $0x18] sm:$0xff]  ;;  %v513_v12 = vld [vmem:[%s2549_s3] sm:$0xff]  ;;  %v515_v13 = vld [vmem:[%s2549_s3 + $0x10] sm:$0xff]  ;;  %s1598_s27 = scalar_lea.vmem %s1363_s22, 128  ;;  %p1605_p0 = scmp.lt.s32.totalorder %s1363_s22, %s1603_s29 }
  0x2f   : > { %792 = vmatprep.subr.mxu0 %v544_v44  ;;  %680 = vmatpush1.msra.mxu1 %v541_v45  ;;  %v638_v14 = vld [vmem:[%s2549_s3 + $0x3e8] sm:$0xff]  ;;  %v640_v15 = vld [vmem:[%s2549_s3 + $0x3f8] sm:$0xff]  ;;  %v637_v16 = vld [vmem:[%s2549_s3 + $0x3e0] sm:$0xff]  ;;  %p1599_p11 = scmp.ne.s32.totalorder %s1363_s22, %s1598_s27  ;;  %p1606_p1 = scmp.lt.s32.totalorder %s1604_s30, %s1598_s27 }
  0x30   : > { %793 = vmatpush1.msra.mxu0 %v543_v46  ;;  %681 = vmatprep.subr.mxu1 %v538_v47  ;;  %v639_v17 = vld [vmem:[%s2549_s3 + $0x3f0] sm:$0xff]  ;;  %v634_v18 = vld [vmem:[%s2549_s3 + $0x3c8] sm:$0xff]  ;;  %v636_v19 = vld [vmem:[%s2549_s3 + $0x3d8] sm:$0xff] }
  0x31   : > { %1433 = vmatmul.mubr.msk.f32.gmra.mxu0 %vm359_vm0, %v340_v48  ;;  %794 = vmatprep.subr.mxu0 %v540_v49  ;;  %v633_v20 = vld [vmem:[%s2549_s3 + $0x3c0] sm:$0xff]  ;;  %v635_v21 = vld [vmem:[%s2549_s3 + $0x3d0] sm:$0xff]  ;;  %v630_v22 = vld [vmem:[%s2549_s3 + $0x3a8] sm:$0xff]  ;;  %p1600_p12 = pnand %p1599_p11, %p1754_p5  ;;  %p1607_p2 = por %p1606_p1, %p1605_p0 }
  0x32   : > { %484 = vmatprep.mubr.f32.mxu0 %v1660_v5  ;;  %682 = vmatpush1.msra.mxu1 %v537_v50  ;;  %v632_v23 = vld [vmem:[%s2549_s3 + $0x3b8] sm:$0xff]  ;;  %v629_v24 = vld [vmem:[%s2549_s3 + $0x3a0] sm:$0xff]  ;;  %v631_v25 = vld [vmem:[%s2549_s3 + $0x3b0] sm:$0xff] }
  0x33   : > { %795 = vmatpush1.msra.mxu0 %v539_v51  ;;  %683 = vmatprep.subr.mxu1 %v534_v52  ;;  %v626_v26 = vld [vmem:[%s2549_s3 + $0x388] sm:$0xff]  ;;  %v628_v27 = vld [vmem:[%s2549_s3 + $0x398] sm:$0xff]  ;;  %v625_v28 = vld [vmem:[%s2549_s3 + $0x380] sm:$0xff]  ;;  %p1601_p13 = pneg %p1600_p12 }
  0x34   : > { %796 = vmatprep.subr.mxu0 %v536_v53  ;;  %684 = vmatpush1.msra.mxu1 %v533_v54  ;;  %v627_v29 = vld [vmem:[%s2549_s3 + $0x390] sm:$0xff]  ;;  %v622_v30 = vld [vmem:[%s2549_s3 + $0x368] sm:$0xff]  ;;  %v624_v31 = vld [vmem:[%s2549_s3 + $0x378] sm:$0xff] }
  0x35   : > { %1434 = vmatmul.mubr.msk.f32.gmra.mxu0 %vm359_vm0, %v341_v55  ;;  %685 = vmatprep.subr.mxu1 %v530_v56  ;;  %v621_v32 = vld [vmem:[%s2549_s3 + $0x360] sm:$0xff]  ;;  %v623_v33 = vld [vmem:[%s2549_s3 + $0x370] sm:$0xff]  ;;  %v618_v34 = vld [vmem:[%s2549_s3 + $0x348] sm:$0xff]  ;;  %p1608_p3 = pnand %p1607_p2, %p1601_p13 }
  0x36   : > { %490 = vmatprep.mubr.f32.mxu0 %v1660_v5  ;;  %797 = vmatpush1.msra.mxu0 %v535_v57  ;;  %v523_v5 = vld [vmem:[%s2549_s3 + $0x50] sm:$0xff]  ;;  %v620_v35 = vld [vmem:[%s2549_s3 + $0x358] sm:$0xff]  ;;  %v617_v36 = vld [vmem:[%s2549_s3 + $0x340] sm:$0xff] }
  0x37   : > { %798 = vmatprep.subr.mxu0 %v532_v58  ;;  %686 = vmatpush1.msra.mxu1 %v529_v59  ;;  %v619_v37 = vld [vmem:[%s2549_s3 + $0x350] sm:$0xff]  ;;  %v614_v38 = vld [vmem:[%s2549_s3 + $0x328] sm:$0xff]  ;;  %v616_v39 = vld [vmem:[%s2549_s3 + $0x338] sm:$0xff] }
  0x38   : > { %799 = vmatpush1.msra.mxu0 %v531_v60  ;;  %687 = vmatprep.subr.mxu1 %v526_v61  ;;  %v613_v40 = vld [vmem:[%s2549_s3 + $0x320] sm:$0xff]  ;;  %v615_v41 = vld [vmem:[%s2549_s3 + $0x330] sm:$0xff]  ;;  %v610_v42 = vld [vmem:[%s2549_s3 + $0x308] sm:$0xff] }
  0x39   : > { %1435 = vmatmul.mubr.msk.f32.gmra.mxu0 %vm359_vm0, %v342_v62  ;;  %800 = vmatprep.subr.mxu0 %v528_v63  ;;  %v612_v43 = vld [vmem:[%s2549_s3 + $0x318] sm:$0xff]  ;;  %v609_v44 = vld [vmem:[%s2549_s3 + $0x300] sm:$0xff]  ;;  %v611_v45 = vld [vmem:[%s2549_s3 + $0x310] sm:$0xff] }
  0x3a   : > { %688 = vmatpush1.msra.mxu1 %v525_v0  ;;  %801 = vmatpush1.msra.mxu0 %v527_v1  ;;  %v606_v46 = vld [vmem:[%s2549_s3 + $0x2e8] sm:$0xff]  ;;  %v608_v47 = vld [vmem:[%s2549_s3 + $0x2f8] sm:$0xff]  ;;  %v605_v48 = vld [vmem:[%s2549_s3 + $0x2e0] sm:$0xff] }
  0x3b   : > { %689 = vmatprep.subr.mxu1 %v522_v2  ;;  %802 = vmatprep.subr.mxu0 %v524_v3  ;;  %v607_v49 = vld [vmem:[%s2549_s3 + $0x2f0] sm:$0xff]  ;;  %v602_v50 = vld [vmem:[%s2549_s3 + $0x2c8] sm:$0xff]  ;;  %v604_v51 = vld [vmem:[%s2549_s3 + $0x2d8] sm:$0xff] }
  0x3c   : > { %690 = vmatpush1.msra.mxu1 %v521_v4  ;;  %803 = vmatpush1.msra.mxu0 %v523_v5  ;;  %v601_v52 = vld [vmem:[%s2549_s3 + $0x2c0] sm:$0xff]  ;;  %v603_v53 = vld [vmem:[%s2549_s3 + $0x2d0] sm:$0xff]  ;;  %v598_v54 = vld [vmem:[%s2549_s3 + $0x2a8] sm:$0xff] }
  0x3d   : > { %691 = vmatprep.subr.mxu1 %v518_v6  ;;  %804 = vmatprep.subr.mxu0 %v520_v7  ;;  %v600_v55 = vld [vmem:[%s2549_s3 + $0x2b8] sm:$0xff]  ;;  %v597_v56 = vld [vmem:[%s2549_s3 + $0x2a0] sm:$0xff]  ;;  %v599_v57 = vld [vmem:[%s2549_s3 + $0x2b0] sm:$0xff] }
  0x3e   : > { %692 = vmatpush1.msra.mxu1 %v517_v8  ;;  %805 = vmatpush1.msra.mxu0 %v519_v9  ;;  %v594_v58 = vld [vmem:[%s2549_s3 + $0x288] sm:$0xff]  ;;  %v596_v59 = vld [vmem:[%s2549_s3 + $0x298] sm:$0xff]  ;;  %v593_v60 = vld [vmem:[%s2549_s3 + $0x280] sm:$0xff] }
  0x3f   : > { %693 = vmatprep.subr.mxu1 %v514_v10  ;;  %806 = vmatprep.subr.mxu0 %v516_v11  ;;  %v595_v61 = vld [vmem:[%s2549_s3 + $0x290] sm:$0xff]  ;;  %v590_v62 = vld [vmem:[%s2549_s3 + $0x268] sm:$0xff]  ;;  %v592_v63 = vld [vmem:[%s2549_s3 + $0x278] sm:$0xff] }
  0x40   : > { %694 = vmatpush1.msra.mxu1 %v513_v12  ;;  %807 = vmatpush1.msra.mxu0 %v515_v13  ;;  %v589_v0 = vld [vmem:[%s2549_s3 + $0x260] sm:$0xff]  ;;  %v591_v1 = vld [vmem:[%s2549_s3 + $0x270] sm:$0xff]  ;;  %v586_v2 = vld [vmem:[%s2549_s3 + $0x248] sm:$0xff] }
  0x41   : > { %695 = vmatprep.subr.mxu1 %v638_v14  ;;  %808 = vmatprep.subr.mxu0 %v640_v15  ;;  %v588_v3 = vld [vmem:[%s2549_s3 + $0x258] sm:$0xff]  ;;  %v585_v4 = vld [vmem:[%s2549_s3 + $0x240] sm:$0xff]  ;;  %v587_v5 = vld [vmem:[%s2549_s3 + $0x250] sm:$0xff] }
  0x42   : > { %696 = vmatpush2.msra.mxu1 %v637_v16  ;;  %809 = vmatpush2.msra.mxu0 %v639_v17  ;;  %v582_v6 = vld [vmem:[%s2549_s3 + $0x228] sm:$0xff]  ;;  %v584_v7 = vld [vmem:[%s2549_s3 + $0x238] sm:$0xff]  ;;  %v581_v8 = vld [vmem:[%s2549_s3 + $0x220] sm:$0xff]  ;;  %v349_v16 = vlaneseq }
  0x43   : > { %697 = vmatprep.subr.mxu1 %v634_v18  ;;  %810 = vmatprep.subr.mxu0 %v636_v19  ;;  %v583_v9 = vld [vmem:[%s2549_s3 + $0x230] sm:$0xff]  ;;  %v578_v10 = vld [vmem:[%s2549_s3 + $0x208] sm:$0xff]  ;;  %v580_v11 = vld [vmem:[%s2549_s3 + $0x218] sm:$0xff] }
  0x44   : > { %698 = vmatpush2.msra.mxu1 %v633_v20  ;;  %811 = vmatpush2.msra.mxu0 %v635_v21  ;;  %v577_v12 = vld [vmem:[%s2549_s3 + $0x200] sm:$0xff]  ;;  %v579_v13 = vld [vmem:[%s2549_s3 + $0x210] sm:$0xff]  ;;  %v952_v14 = vld [vmem:[%s2551_s5 + $0xf8] sm:$0xff]  ;;  %v2197_v17 = vshrl.u32 %v349_v16, 7 }
  0x45   : > { %699 = vmatprep.subr.mxu1 %v630_v22  ;;  %812 = vmatprep.subr.mxu0 %v632_v23  ;;  %v984_v15 = vld [vmem:[%s2551_s5 + $0x1f8] sm:$0xff]  ;;  %v347_v19 = vld [vmem:[%s2548_s2] sm:$0x3] }
  0x46   : > { %700 = vmatpush2.msra.mxu1 %v629_v24  ;;  %813 = vmatpush2.msra.mxu0 %v631_v25  ;;  %v351_v18 = vsub.s32 0, %v2197_v17  ;;  %v355_v20 = vsub.s32 1, %v2197_v17 }
  0x47   : > { %701 = vmatprep.subr.mxu1 %v626_v26  ;;  %814 = vmatprep.subr.mxu0 %v628_v27 }
  0x48   : > { %702 = vmatpush2.msra.mxu1 %v625_v28  ;;  %815 = vmatpush2.msra.mxu0 %v627_v29  ;;  %v2206_v21 = vrot.slane %v347_v19, %v351_v18  ;;  %v2210_v22 = vrot.slane %v347_v19, %v355_v20 }
  0x49   : > { %703 = vmatprep.subr.mxu1 %v622_v30  ;;  %816 = vmatprep.subr.mxu0 %v624_v31 }
  0x4a   : > { %704 = vmatpush2.msra.mxu1 %v621_v32  ;;  %817 = vmatpush2.msra.mxu0 %v623_v33  ;;  %v936_v32 = vld [vmem:[%s2551_s5 + $0x78] sm:$0xff] }
  0x4b   : > { %705 = vmatprep.subr.mxu1 %v618_v34  ;;  %818 = vmatprep.subr.mxu0 %v620_v35  ;;  %v968_v33 = vld [vmem:[%s2551_s5 + $0x178] sm:$0xff]  ;;  %v951_v35 = vld [vmem:[%s2551_s5 + $0xf0] sm:$0xff] }
  0x4c   : > { %706 = vmatpush2.msra.mxu1 %v617_v36  ;;  %819 = vmatpush2.msra.mxu0 %v619_v37  ;;  %v983_v36 = vld [vmem:[%s2551_s5 + $0x1f0] sm:$0xff] }
  0x4d   : > { %707 = vmatprep.subr.mxu1 %v614_v38  ;;  %820 = vmatprep.subr.mxu0 %v616_v39 }
  0x4e   : > { %708 = vmatpush2.msra.mxu1 %v613_v40  ;;  %821 = vmatpush2.msra.mxu0 %v615_v41 }
  0x4f   : > { %709 = vmatprep.subr.mxu1 %v610_v42  ;;  %822 = vmatprep.subr.mxu0 %v612_v43  ;;  %v935_v42 = vld [vmem:[%s2551_s5 + $0x70] sm:$0xff] }
  0x50   : > { %710 = vmatpush2.msra.mxu1 %v609_v44  ;;  %823 = vmatpush2.msra.mxu0 %v611_v45  ;;  %v967_v43 = vld [vmem:[%s2551_s5 + $0x170] sm:$0xff]  ;;  %v950_v45 = vld [vmem:[%s2551_s5 + $0xe8] sm:$0xff] }
  0x51   : > { %711 = vmatprep.subr.mxu1 %v606_v46  ;;  %824 = vmatprep.subr.mxu0 %v608_v47  ;;  %v982_v46 = vld [vmem:[%s2551_s5 + $0x1e8] sm:$0xff] }
  0x52   : > { %712 = vmatpush2.msra.mxu1 %v605_v48  ;;  %825 = vmatpush2.msra.mxu0 %v607_v49 }
  0x53   : > { %713 = vmatprep.subr.mxu1 %v602_v50  ;;  %826 = vmatprep.subr.mxu0 %v604_v51 }
  0x54   : > { %714 = vmatpush2.msra.mxu1 %v601_v52  ;;  %827 = vmatpush2.msra.mxu0 %v603_v53  ;;  %v934_v52 = vld [vmem:[%s2551_s5 + $0x68] sm:$0xff] }
  0x55   : > { %715 = vmatprep.subr.mxu1 %v598_v54  ;;  %828 = vmatprep.subr.mxu0 %v600_v55  ;;  %v966_v53 = vld [vmem:[%s2551_s5 + $0x168] sm:$0xff]  ;;  %v949_v55 = vld [vmem:[%s2551_s5 + $0xe0] sm:$0xff] }
  0x56   : > { %716 = vmatpush2.msra.mxu1 %v597_v56  ;;  %829 = vmatpush2.msra.mxu0 %v599_v57  ;;  %v981_v56 = vld [vmem:[%s2551_s5 + $0x1e0] sm:$0xff] }
  0x57   : > { %717 = vmatprep.subr.mxu1 %v594_v58  ;;  %830 = vmatprep.subr.mxu0 %v596_v59 }
  0x58   : > { %718 = vmatpush2.msra.mxu1 %v593_v60  ;;  %831 = vmatpush2.msra.mxu0 %v595_v61 }
  0x59   : > { %719 = vmatprep.subr.mxu1 %v590_v62  ;;  %832 = vmatprep.subr.mxu0 %v592_v63  ;;  %v933_v62 = vld [vmem:[%s2551_s5 + $0x60] sm:$0xff] }
  0x5a   : > { %720 = vmatpush2.msra.mxu1 %v589_v0  ;;  %833 = vmatpush2.msra.mxu0 %v591_v1  ;;  %v965_v63 = vld [vmem:[%s2551_s5 + $0x160] sm:$0xff]  ;;  %v948_v1 = vld [vmem:[%s2551_s5 + $0xd8] sm:$0xff] }
  0x5b   : > { %721 = vmatprep.subr.mxu1 %v586_v2  ;;  %834 = vmatprep.subr.mxu0 %v588_v3  ;;  %v980_v2 = vld [vmem:[%s2551_s5 + $0x1d8] sm:$0xff] }
  0x5c   : > { %722 = vmatpush2.msra.mxu1 %v585_v4  ;;  %835 = vmatpush2.msra.mxu0 %v587_v5 }
  0x5d   : > { %723 = vmatprep.subr.mxu1 %v582_v6  ;;  %836 = vmatprep.subr.mxu0 %v584_v7 }
  0x5e   : > { %724 = vmatpush2.msra.mxu1 %v581_v8  ;;  %837 = vmatpush2.msra.mxu0 %v583_v9  ;;  %v932_v8 = vld [vmem:[%s2551_s5 + $0x58] sm:$0xff] }
  0x5f   : > { %725 = vmatprep.subr.mxu1 %v578_v10  ;;  %838 = vmatprep.subr.mxu0 %v580_v11  ;;  %v964_v9 = vld [vmem:[%s2551_s5 + $0x158] sm:$0xff]  ;;  %v947_v11 = vld [vmem:[%s2551_s5 + $0xd0] sm:$0xff] }
  0x60   : > { %726 = vmatpush2.msra.mxu1 %v577_v12  ;;  %839 = vmatpush2.msra.mxu0 %v579_v13  ;;  %v979_v12 = vld [vmem:[%s2551_s5 + $0x1d0] sm:$0xff] }
  0x61   : > { %1443 = vmatprep.subr.mxu1 %v952_v14  ;;  %1499 = vmatprep.subr.mxu0 %v984_v15 }
  0xdc   : > { %v450_v23 = vpop.f32.mrf.mxu0 }
  0xdd   : > { %v451_v24 = vadd.f32 %v450_v23, %v2206_v21 }
  0xde   : > { %v452_v25 = vpop.f32.mrf.mxu0 }
  0xdf   : > { %v453_v26 = vadd.f32 %v452_v25, %v2210_v22  ;;  %v497_v29 = vmax.f32 %v451_v24, 0.0  ;;  %v931_v24 = vld [vmem:[%s2551_s5 + $0x50] sm:$0xff] }
  0xe0   : > { %v963_v25 = vld [vmem:[%s2551_s5 + $0x150] sm:$0xff] }
  0xe1   : > { %v456_v27 = vpop.f32.mrf.mxu0  ;;  %v498_v28 = vmax.f32 %v453_v26, 0.0 }
  0xe2   : > { %v457_v30 = vadd.f32 %v456_v27, %v2206_v21  ;;  %v946_v27 = vld [vmem:[%s2551_s5 + $0xc8] sm:$0xff] }
  0xe3   : > { %v458_v31 = vpop.f32.mrf.mxu0  ;;  %727 = vmatprep.mubr.f32.mxu1 %v498_v28  ;;  %840 = vmatprep.mubr.f32.mxu0 %v498_v28  ;;  %v978_v28 = vld [vmem:[%s2551_s5 + $0x1c8] sm:$0xff] }
  0xe4   : > { %v459_v34 = vadd.f32 %v458_v31, %v2210_v22  ;;  %728 = vmatmul.mubr.f32.vlgmr.msra.gmra.mxu1 %v497_v29  ;;  %841 = vmatmul.mubr.f32.vlgmr.msra.gmra.mxu0 %v497_v29  ;;  %v499_v39 = vmax.f32 %v457_v30, 0.0 }
  0xe5   : > { %v462_v37 = vpop.f32.mrf.mxu0  ;;  %1444 = vmatpush3.msra.mxu1 %v936_v32  ;;  %1500 = vmatpush3.msra.mxu0 %v968_v33 }
  0xe6   : > { %v500_v38 = vmax.f32 %v459_v34, 0.0  ;;  %v463_v40 = vadd.f32 %v462_v37, %v2206_v21  ;;  %1445 = vmatprep.subr.mxu1 %v951_v35  ;;  %1501 = vmatprep.subr.mxu0 %v983_v36  ;;  %v930_v34 = vld [vmem:[%s2551_s5 + $0x48] sm:$0xff]  ;;  %v945_v37 = vld [vmem:[%s2551_s5 + $0xc0] sm:$0xff] }
  0xe7   : > { %v464_v41 = vpop.f32.mrf.mxu0  ;;  %1446 = vmatpush3.msra.mxu1 %v935_v42  ;;  %1502 = vmatpush3.msra.mxu0 %v967_v43  ;;  %v962_v35 = vld [vmem:[%s2551_s5 + $0x148] sm:$0xff]  ;;  %v976_v42 = vld [vmem:[%s2551_s5 + $0x1b8] sm:$0xff] }
  0xe8   : > { %v465_v44 = vadd.f32 %v464_v41, %v2210_v22  ;;  %733 = vmatprep.mubr.f32.mxu1 %v500_v38  ;;  %846 = vmatprep.mubr.f32.mxu0 %v500_v38  ;;  %v501_v49 = vmax.f32 %v463_v40, 0.0  ;;  %v961_v40 = vld [vmem:[%s2551_s5 + $0x140] sm:$0xff]  ;;  %v944_v41 = vld [vmem:[%s2551_s5 + $0xb8] sm:$0xff] }
  0xe9   : > { %v468_v47 = vpop.f32.mrf.mxu0  ;;  %734 = vmatmul.mubr.f32.gmra.mxu1 %v499_v39  ;;  %847 = vmatmul.mubr.f32.gmra.mxu0 %v499_v39  ;;  %v928_v43 = vld [vmem:[%s2551_s5 + $0x38] sm:$0xff] }
  0xea   : > { %v502_v48 = vmax.f32 %v465_v44, 0.0  ;;  %v469_v50 = vadd.f32 %v468_v47, %v2206_v21  ;;  %1447 = vmatprep.subr.mxu1 %v950_v45  ;;  %1503 = vmatprep.subr.mxu0 %v982_v46  ;;  %v960_v44 = vld [vmem:[%s2551_s5 + $0x138] sm:$0xff]  ;;  %v943_v45 = vld [vmem:[%s2551_s5 + $0xb0] sm:$0xff] }
  0xeb   : > { %v470_v51 = vpop.f32.mrf.mxu0  ;;  %1448 = vmatpush3.msra.mxu1 %v934_v52  ;;  %1504 = vmatpush3.msra.mxu0 %v966_v53  ;;  %v975_v46 = vld [vmem:[%s2551_s5 + $0x1b0] sm:$0xff]  ;;  %v958_v52 = vld [vmem:[%s2551_s5 + $0x128] sm:$0xff]  ;;  %v941_v53 = vld [vmem:[%s2551_s5 + $0xa0] sm:$0xff] }
  0xec   : > { %v471_v54 = vadd.f32 %v470_v51, %v2210_v22  ;;  %739 = vmatprep.mubr.f32.mxu1 %v502_v48  ;;  %852 = vmatprep.mubr.f32.mxu0 %v502_v48  ;;  %v503_v59 = vmax.f32 %v469_v50, 0.0  ;;  %v927_v47 = vld [vmem:[%s2551_s5 + $0x30] sm:$0xff]  ;;  %v974_v50 = vld [vmem:[%s2551_s5 + $0x1a8] sm:$0xff] }
  0xed   : > { %v474_v57 = vpop.f32.mrf.mxu0  ;;  %740 = vmatmul.mubr.f32.gmra.mxu1 %v501_v49  ;;  %853 = vmatmul.mubr.f32.gmra.mxu0 %v501_v49  ;;  %v959_v48 = vld [vmem:[%s2551_s5 + $0x130] sm:$0xff]  ;;  %v942_v49 = vld [vmem:[%s2551_s5 + $0xa8] sm:$0xff] }
  0xee   : > { %v504_v58 = vmax.f32 %v471_v54, 0.0  ;;  %v475_v60 = vadd.f32 %v474_v57, %v2206_v21  ;;  %1449 = vmatprep.subr.mxu1 %v949_v55  ;;  %1505 = vmatprep.subr.mxu0 %v981_v56  ;;  %v926_v51 = vld [vmem:[%s2551_s5 + $0x28] sm:$0xff]  ;;  %v973_v54 = vld [vmem:[%s2551_s5 + $0x1a0] sm:$0xff]  ;;  %v940_v57 = vld [vmem:[%s2551_s5 + $0x98] sm:$0xff] }
  0xef   : > { %v476_v61 = vpop.f32.mrf.mxu0  ;;  %1450 = vmatpush3.msra.mxu1 %v933_v62  ;;  %1506 = vmatpush3.msra.mxu0 %v965_v63  ;;  %v925_v55 = vld [vmem:[%s2551_s5 + $0x20] sm:$0xff]  ;;  %v971_v62 = vld [vmem:[%s2551_s5 + $0x190] sm:$0xff] }
  0xf0   : > { %v477_v0 = vadd.f32 %v476_v61, %v2210_v22  ;;  %745 = vmatprep.mubr.f32.mxu1 %v504_v58  ;;  %858 = vmatprep.mubr.f32.mxu0 %v504_v58  ;;  %v505_v5 = vmax.f32 %v475_v60, 0.0  ;;  %v957_v56 = vld [vmem:[%s2551_s5 + $0x120] sm:$0xff]  ;;  %v972_v58 = vld [vmem:[%s2551_s5 + $0x198] sm:$0xff]  ;;  %v939_v61 = vld [vmem:[%s2551_s5 + $0x90] sm:$0xff] }
  0xf1   : > { %v480_v3 = vpop.f32.mrf.mxu0  ;;  %746 = vmatmul.mubr.f32.gmra.mxu1 %v503_v59  ;;  %859 = vmatmul.mubr.f32.gmra.mxu0 %v503_v59  ;;  %v924_v59 = vld [vmem:[%s2551_s5 + $0x18] sm:$0xff]  ;;  %v923_v63 = vld [vmem:[%s2551_s5 + $0x10] sm:$0xff] }
  0xf2   : > { %v506_v4 = vmax.f32 %v477_v0, 0.0  ;;  %v481_v6 = vadd.f32 %v480_v3, %v2206_v21  ;;  %1451 = vmatprep.subr.mxu1 %v948_v1  ;;  %1507 = vmatprep.subr.mxu0 %v980_v2  ;;  %v956_v60 = vld [vmem:[%s2551_s5 + $0x118] sm:$0xff]  ;;  %v955_v0 = vld [vmem:[%s2551_s5 + $0x110] sm:$0xff]  ;;  %v938_v1 = vld [vmem:[%s2551_s5 + $0x88] sm:$0xff] }
  0xf3   : > { %v482_v7 = vpop.f32.mrf.mxu0  ;;  %1452 = vmatpush3.msra.mxu1 %v932_v8  ;;  %1508 = vmatpush3.msra.mxu0 %v964_v9  ;;  %v970_v2 = vld [vmem:[%s2551_s5 + $0x188] sm:$0xff]  ;;  %v953_v8 = vld [vmem:[%s2551_s5 + $0x100] sm:$0xff]  ;;  %v653_v9 = vsub.s32 2, %v2197_v17 }
  0xf4   : > { %v483_v10 = vadd.f32 %v482_v7, %v2210_v22  ;;  %751 = vmatprep.mubr.f32.mxu1 %v506_v4  ;;  %864 = vmatprep.mubr.f32.mxu0 %v506_v4  ;;  %v507_v15 = vmax.f32 %v481_v6, 0.0  ;;  %v922_v3 = vld [vmem:[%s2551_s5 + $0x8] sm:$0xff]  ;;  %v969_v6 = vld [vmem:[%s2551_s5 + $0x180] sm:$0xff] }
  0xf5   : > { %v486_v13 = vpop.f32.mrf.mxu0  ;;  %752 = vmatmul.mubr.f32.gmra.mxu1 %v505_v5  ;;  %865 = vmatmul.mubr.f32.gmra.mxu0 %v505_v5  ;;  %v954_v4 = vld [vmem:[%s2551_s5 + $0x108] sm:$0xff]  ;;  %v937_v5 = vld [vmem:[%s2551_s5 + $0x80] sm:$0xff] }
  0xf6   : > { %v508_v14 = vmax.f32 %v483_v10, 0.0  ;;  %v487_v19 = vadd.f32 %v486_v13, %v2206_v21  ;;  %1453 = vmatprep.subr.mxu1 %v947_v11  ;;  %1509 = vmatprep.subr.mxu0 %v979_v12  ;;  %v921_v7 = vld [vmem:[%s2551_s5] sm:$0xff]  ;;  %v657_v11 = vsub.s32 3, %v2197_v17 }
  0xf7   : > { %v488_v23 = vpop.f32.mrf.mxu0  ;;  %1454 = vmatpush3.msra.mxu1 %v931_v24  ;;  %1510 = vmatpush3.msra.mxu0 %v963_v25  ;;  %v641_v10 = vld [vmem:[%s2550_s4] sm:$0xf] }
  0xf8   : > { %v489_v26 = vadd.f32 %v488_v23, %v2210_v22  ;;  %757 = vmatprep.mubr.f32.mxu1 %v508_v14  ;;  %870 = vmatprep.mubr.f32.mxu0 %v508_v14  ;;  %v509_v31 = vmax.f32 %v487_v19, 0.0  ;;  %v2421_v12 = vrot.slane %v641_v10, %v351_v18  ;;  %v2423_v13 = vrot.slane %v641_v10, %v653_v9 }
  0xf9   : > { %v492_v29 = vpop.f32.mrf.mxu0  ;;  %758 = vmatmul.mubr.f32.gmra.mxu1 %v507_v15  ;;  %871 = vmatmul.mubr.f32.gmra.mxu0 %v507_v15  ;;  %v2427_v14 = vrot.slane %v641_v10, %v355_v20  ;;  %v2429_v15 = vrot.slane %v641_v10, %v657_v11 }
  0xfa   : > { %v510_v30 = vmax.f32 %v489_v26, 0.0  ;;  %v493_v32 = vadd.f32 %v492_v29, %v2206_v21  ;;  %1455 = vmatprep.subr.mxu1 %v946_v27  ;;  %1511 = vmatprep.subr.mxu0 %v978_v28  ;;  %v977_v21 = vld [vmem:[%s2551_s5 + $0x1c0] sm:$0xff] }
  0xfb   : > { %v494_v33 = vpop.f32.mrf.mxu0  ;;  %1456 = vmatpush3.msra.mxu1 %v930_v34  ;;  %1512 = vmatpush3.msra.mxu0 %v962_v35 }
  0xfc   : > { %v495_v36 = vadd.f32 %v494_v33, %v2210_v22  ;;  %763 = vmatprep.mubr.f32.mxu1 %v510_v30  ;;  %876 = vmatprep.mubr.f32.mxu0 %v510_v30  ;;  %v511_v39 = vmax.f32 %v493_v32, 0.0  ;;  %v929_v22 = vld [vmem:[%s2551_s5 + $0x40] sm:$0xff] }
  0xfd   : > { %764 = vmatmul.mubr.f32.gmra.mxu1 %v509_v31  ;;  %877 = vmatmul.mubr.f32.gmra.mxu0 %v509_v31 }
  0xfe   : > { %v512_v38 = vmax.f32 %v495_v36, 0.0  ;;  %1457 = vmatprep.subr.mxu1 %v945_v37  ;;  %1513 = vmatprep.subr.mxu0 %v977_v21 }
  0xff   : > { %1458 = vmatpush3.msra.mxu1 %v929_v22  ;;  %1514 = vmatpush3.msra.mxu0 %v961_v40 }
 0x100   : > { %769 = vmatprep.mubr.f32.mxu1 %v512_v38  ;;  %882 = vmatprep.mubr.f32.mxu0 %v512_v38 }
 0x101   : > { %770 = vmatmul.mubr.f32.gmra.mxu1 %v511_v39  ;;  %883 = vmatmul.mubr.f32.gmra.mxu0 %v511_v39 }
 0x102   : > { %1459 = vmatprep.subr.mxu1 %v944_v41  ;;  %1515 = vmatprep.subr.mxu0 %v976_v42 }
 0x103   : > { %1460 = vmatpush3.msra.mxu1 %v928_v43  ;;  %1516 = vmatpush3.msra.mxu0 %v960_v44 }
 0x104   : > { %1461 = vmatprep.subr.mxu1 %v943_v45  ;;  %1517 = vmatprep.subr.mxu0 %v975_v46 }
 0x105   : > { %1462 = vmatpush3.msra.mxu1 %v927_v47  ;;  %1518 = vmatpush3.msra.mxu0 %v959_v48 }
 0x106   : > { %1463 = vmatprep.subr.mxu1 %v942_v49  ;;  %1519 = vmatprep.subr.mxu0 %v974_v50 }
 0x107   : > { %1464 = vmatpush3.msra.mxu1 %v926_v51  ;;  %1520 = vmatpush3.msra.mxu0 %v958_v52 }
 0x108   : > { %1465 = vmatprep.subr.mxu1 %v941_v53  ;;  %1521 = vmatprep.subr.mxu0 %v973_v54 }
 0x109   : > { %1466 = vmatpush3.msra.mxu1 %v925_v55  ;;  %1522 = vmatpush3.msra.mxu0 %v957_v56 }
 0x10a   : > { %1467 = vmatprep.subr.mxu1 %v940_v57  ;;  %1523 = vmatprep.subr.mxu0 %v972_v58 }
 0x10b   : > { %1468 = vmatpush3.msra.mxu1 %v924_v59  ;;  %1524 = vmatpush3.msra.mxu0 %v956_v60 }
 0x10c   : > { %1469 = vmatprep.subr.mxu1 %v939_v61  ;;  %1525 = vmatprep.subr.mxu0 %v971_v62 }
 0x10d   : > { %1470 = vmatpush3.msra.mxu1 %v923_v63  ;;  %1526 = vmatpush3.msra.mxu0 %v955_v0 }
 0x10e   : > { %1471 = vmatprep.subr.mxu1 %v938_v1  ;;  %1527 = vmatprep.subr.mxu0 %v970_v2 }
 0x10f   : > { %1472 = vmatpush3.msra.mxu1 %v922_v3  ;;  %1528 = vmatpush3.msra.mxu0 %v954_v4 }
 0x110   : > { %1473 = vmatprep.subr.mxu1 %v937_v5  ;;  %1529 = vmatprep.subr.mxu0 %v969_v6 }
 0x111   : > { %1474 = vmatpush3.msra.mxu1 %v921_v7  ;;  %1530 = vmatpush3.msra.mxu0 %v953_v8 }
 0x1a4   : > { %v729_v19 = vpop.f32.mrf.mxu1  ;;  %v842_v23 = vpop.f32.mrf.mxu0 }
 0x1a5   : > { %v730_v24 = vadd.f32 %v729_v19, %v2421_v12  ;;  %v843_v25 = vadd.f32 %v842_v23, %v2423_v13 }
 0x1a6   : > { %v731_v26 = vpop.f32.mrf.mxu1  ;;  %v844_v27 = vpop.f32.mrf.mxu0 }
 0x1a7   : > { %v732_v28 = vadd.f32 %v731_v26, %v2427_v14  ;;  %v845_v18 = vadd.f32 %v844_v27, %v2429_v15  ;;  %v889_v20 = vmax.f32 %v730_v24, 0.0  ;;  %v891_v33 = vmax.f32 %v843_v25, 0.0 }
 0x1a9   : > { %v735_v29 = vpop.f32.mrf.mxu1  ;;  %v848_v30 = vpop.f32.mrf.mxu0  ;;  %v890_v31 = vmax.f32 %v732_v28, 0.0  ;;  %v892_v32 = vmax.f32 %v845_v18, 0.0 }
 0x1aa   : > { %v736_v34 = vadd.f32 %v735_v29, %v2421_v12  ;;  %v849_v35 = vadd.f32 %v848_v30, %v2423_v13 }
 0x1ab   : > { %v737_v36 = vpop.f32.mrf.mxu1  ;;  %v850_v37 = vpop.f32.mrf.mxu0  ;;  %1056 = vmatprep.mubr.f32.mxu1 %v890_v31  ;;  %1161 = vmatprep.mubr.f32.mxu0 %v892_v32 }
 0x1ac   : > { %v738_v21 = vadd.f32 %v737_v36, %v2427_v14  ;;  %v851_v38 = vadd.f32 %v850_v37, %v2429_v15  ;;  %1057 = vmatmul.mubr.f32.vlgmr.msra.gmra.mxu1 %v889_v20  ;;  %1162 = vmatmul.mubr.f32.vlgmr.msra.gmra.mxu0 %v891_v33  ;;  %v893_v42 = vmax.f32 %v736_v34, 0.0  ;;  %v895_v43 = vmax.f32 %v849_v35, 0.0 }
 0x1ad   : > { %v741_v39 = vpop.f32.mrf.mxu1  ;;  %v854_v22 = vpop.f32.mrf.mxu0 }
 0x1ae   : > { %v894_v40 = vmax.f32 %v738_v21, 0.0  ;;  %v896_v41 = vmax.f32 %v851_v38, 0.0  ;;  %v742_v44 = vadd.f32 %v741_v39, %v2421_v12  ;;  %v855_v45 = vadd.f32 %v854_v22, %v2423_v13 }
 0x1af   : > { %v743_v46 = vpop.f32.mrf.mxu1  ;;  %v856_v47 = vpop.f32.mrf.mxu0 }
 0x1b0   : > { %v744_v48 = vadd.f32 %v743_v46, %v2427_v14  ;;  %v857_v49 = vadd.f32 %v856_v47, %v2429_v15  ;;  %1061 = vmatprep.mubr.f32.mxu1 %v894_v40  ;;  %1166 = vmatprep.mubr.f32.mxu0 %v896_v41  ;;  %v897_v54 = vmax.f32 %v742_v44, 0.0  ;;  %v899_v55 = vmax.f32 %v855_v45, 0.0 }
 0x1b1   : > { %v747_v50 = vpop.f32.mrf.mxu1  ;;  %v860_v51 = vpop.f32.mrf.mxu0  ;;  %1062 = vmatmul.mubr.f32.gmra.mxu1 %v893_v42  ;;  %1167 = vmatmul.mubr.f32.gmra.mxu0 %v895_v43 }
 0x1b2   : > { %v898_v52 = vmax.f32 %v744_v48, 0.0  ;;  %v900_v53 = vmax.f32 %v857_v49, 0.0  ;;  %v748_v56 = vadd.f32 %v747_v50, %v2421_v12  ;;  %v861_v57 = vadd.f32 %v860_v51, %v2423_v13 }
 0x1b3   : > { %v749_v58 = vpop.f32.mrf.mxu1  ;;  %v862_v59 = vpop.f32.mrf.mxu0 }
 0x1b4   : > { %v750_v60 = vadd.f32 %v749_v58, %v2427_v14  ;;  %v863_v61 = vadd.f32 %v862_v59, %v2429_v15  ;;  %1066 = vmatprep.mubr.f32.mxu1 %v898_v52  ;;  %1171 = vmatprep.mubr.f32.mxu0 %v900_v53  ;;  %v901_v2 = vmax.f32 %v748_v56, 0.0  ;;  %v903_v3 = vmax.f32 %v861_v57, 0.0 }
 0x1b5   : > { %v753_v62 = vpop.f32.mrf.mxu1  ;;  %v866_v63 = vpop.f32.mrf.mxu0  ;;  %1067 = vmatmul.mubr.f32.gmra.mxu1 %v897_v54  ;;  %1172 = vmatmul.mubr.f32.gmra.mxu0 %v899_v55 }
 0x1b6   : > { %v902_v0 = vmax.f32 %v750_v60, 0.0  ;;  %v904_v1 = vmax.f32 %v863_v61, 0.0  ;;  %v754_v4 = vadd.f32 %v753_v62, %v2421_v12  ;;  %v867_v5 = vadd.f32 %v866_v63, %v2423_v13 }
 0x1b7   : > { %v755_v6 = vpop.f32.mrf.mxu1  ;;  %v868_v7 = vpop.f32.mrf.mxu0 }
 0x1b8   : > { %v756_v8 = vadd.f32 %v755_v6, %v2427_v14  ;;  %v869_v9 = vadd.f32 %v868_v7, %v2429_v15  ;;  %1071 = vmatprep.mubr.f32.mxu1 %v902_v0  ;;  %1176 = vmatprep.mubr.f32.mxu0 %v904_v1  ;;  %v905_v24 = vmax.f32 %v754_v4, 0.0  ;;  %v907_v25 = vmax.f32 %v867_v5, 0.0  ;;  %v2472_v4 = vld [vmem:[%s2553_s7] ss:$0 sm:$0xff] }
 0x1b9   : > { %v759_v10 = vpop.f32.mrf.mxu1  ;;  %v872_v11 = vpop.f32.mrf.mxu0  ;;  %1072 = vmatmul.mubr.f32.gmra.mxu1 %v901_v2  ;;  %1177 = vmatmul.mubr.f32.gmra.mxu0 %v903_v3 }
 0x1ba   : > { %v906_v19 = vmax.f32 %v756_v8, 0.0  ;;  %v908_v23 = vmax.f32 %v869_v9, 0.0  ;;  %v760_v26 = vadd.f32 %v759_v10, %v2421_v12  ;;  %v873_v27 = vadd.f32 %v872_v11, %v2423_v13 }
 0x1bb   : > { %v761_v28 = vpop.f32.mrf.mxu1  ;;  %v874_v18 = vpop.f32.mrf.mxu0 }
 0x1bc   : > { %v762_v29 = vadd.f32 %v761_v28, %v2427_v14  ;;  %v875_v30 = vadd.f32 %v874_v18, %v2429_v15  ;;  %1076 = vmatprep.mubr.f32.mxu1 %v906_v19  ;;  %1181 = vmatprep.mubr.f32.mxu0 %v908_v23  ;;  %v909_v34 = vmax.f32 %v760_v26, 0.0  ;;  %v911_v35 = vmax.f32 %v873_v27, 0.0 }
 0x1bd   : > { %v765_v31 = vpop.f32.mrf.mxu1  ;;  %v878_v32 = vpop.f32.mrf.mxu0  ;;  %1077 = vmatmul.mubr.f32.gmra.mxu1 %v905_v24  ;;  %1182 = vmatmul.mubr.f32.gmra.mxu0 %v907_v25 }
 0x1be   : > { %v910_v20 = vmax.f32 %v762_v29, 0.0  ;;  %v912_v33 = vmax.f32 %v875_v30, 0.0  ;;  %v766_v36 = vadd.f32 %v765_v31, %v2421_v12  ;;  %v879_v37 = vadd.f32 %v878_v32, %v2423_v13 }
 0x1bf   : > { %v767_v21 = vpop.f32.mrf.mxu1  ;;  %v880_v38 = vpop.f32.mrf.mxu0 }
 0x1c0   : > { %v768_v39 = vadd.f32 %v767_v21, %v2427_v14  ;;  %v881_v22 = vadd.f32 %v880_v38, %v2429_v15  ;;  %1081 = vmatprep.mubr.f32.mxu1 %v910_v20  ;;  %1186 = vmatprep.mubr.f32.mxu0 %v912_v33  ;;  %v913_v44 = vmax.f32 %v766_v36, 0.0  ;;  %v915_v45 = vmax.f32 %v879_v37, 0.0 }
 0x1c1   : > { %v771_v40 = vpop.f32.mrf.mxu1  ;;  %v884_v41 = vpop.f32.mrf.mxu0  ;;  %1082 = vmatmul.mubr.f32.gmra.mxu1 %v909_v34  ;;  %1187 = vmatmul.mubr.f32.gmra.mxu0 %v911_v35 }
 0x1c2   : > { %v914_v42 = vmax.f32 %v768_v39, 0.0  ;;  %v916_v43 = vmax.f32 %v881_v22, 0.0  ;;  %v772_v46 = vadd.f32 %v771_v40, %v2421_v12  ;;  %v885_v47 = vadd.f32 %v884_v41, %v2423_v13 }
 0x1c3   : > { %v773_v48 = vpop.f32.mrf.mxu1  ;;  %v886_v49 = vpop.f32.mrf.mxu0 }
 0x1c4   : > { %v774_v50 = vadd.f32 %v773_v48, %v2427_v14  ;;  %v887_v51 = vadd.f32 %v886_v49, %v2429_v15  ;;  %1086 = vmatprep.mubr.f32.mxu1 %v914_v42  ;;  %1191 = vmatprep.mubr.f32.mxu0 %v916_v43  ;;  %v917_v54 = vmax.f32 %v772_v46, 0.0  ;;  %v919_v55 = vmax.f32 %v885_v47, 0.0  ;;  %v2466_v14 = vld [vmem:[%s2552_s6] ss:$0 sm:$0xff] }
 0x1c5   : > { %1087 = vmatmul.mubr.f32.gmra.mxu1 %v913_v44  ;;  %1192 = vmatmul.mubr.f32.gmra.mxu0 %v915_v45 }
 0x1c6   : > { %v918_v52 = vmax.f32 %v774_v50, 0.0  ;;  %v920_v53 = vmax.f32 %v887_v51, 0.0 }
 0x1c8   : > { %1091 = vmatprep.mubr.f32.mxu1 %v918_v52  ;;  %1196 = vmatprep.mubr.f32.mxu0 %v920_v53 }
 0x1c9   : > { %1092 = vmatmul.mubr.f32.gmra.mxu1 %v917_v54  ;;  %1197 = vmatmul.mubr.f32.gmra.mxu0 %v919_v55 }
 0x26c   : > { %v1475_v12 = vpop.f32.mrf.mxu1  ;;  %v1531_v13 = vpop.f32.mrf.mxu0 }
 0x26e   : > { %v1476_v15 = vpop.f32.mrf.mxu1  ;;  %v1532_v56 = vpop.f32.mrf.mxu0 }
 0x26f   : > { %v1477_v57 = vadd.f32 %v1476_v15, %v1475_v12  ;;  %v1533_v61 = vadd.f32 %v1532_v56, %v1531_v13  ;;  %v1661_v15 = vmov 0  }
 0x270   : > { %1596 = vset.pattern.permute.xlu0 %v1661_v15  ;;  %1597 = vset.pattern.permute.xlu1 %v1661_v15 }
 0x271   : > { %v1478_v58 = vpop.f32.mrf.mxu1  ;;  %v1534_v59 = vpop.f32.mrf.mxu0  ;;  %v1059_v60 = vadd.f32 %v1477_v57, %v2466_v14 }
 0x273   : > { %v1479_v62 = vpop.f32.mrf.mxu1  ;;  %v1535_v63 = vpop.f32.mrf.mxu0  ;;  %v1164_v0 = vadd.f32 %v1533_v61, %v1059_v60 }
 0x274   : > { %v1480_v1 = vadd.f32 %v1479_v62, %v1478_v58  ;;  %v1536_v7 = vadd.f32 %v1535_v63, %v1534_v59 }
 0x275   : > { %v1481_v2 = vpop.f32.mrf.mxu1  ;;  %v1537_v3 = vpop.f32.mrf.mxu0  ;;  %v1202_v5 = vmax.f32 %v1164_v0, 0.0 }
 0x276   : > { %v1064_v6 = vadd.f32 %v1480_v1, %v2466_v14 }
 0x277   : > { %v1482_v8 = vpop.f32.mrf.mxu1  ;;  %v1538_v9 = vpop.f32.mrf.mxu0  ;;  %v1217_v19 = vmul.f32 %v2472_v4, %v1202_v5 }
 0x278   : > { %v1169_v10 = vadd.f32 %v1536_v7, %v1064_v6  ;;  %v1483_v11 = vadd.f32 %v1482_v8, %v1481_v2  ;;  %v1539_v27 = vadd.f32 %v1538_v9, %v1537_v3 }
 0x279   : > { %v1484_v23 = vpop.f32.mrf.mxu1  ;;  %v1540_v24 = vpop.f32.mrf.mxu0  ;;  %v1226_v28 = vsel %vm1225_vm1, %v1217_v19, 0.0 }
 0x27a   : > { %v1203_v25 = vmax.f32 %v1169_v10, 0.0  ;;  %v1069_v26 = vadd.f32 %v1483_v11, %v2466_v14  ;;  %1227 = vadd.xlane.f32.xlu0 %v1226_v28 }
 0x27b   : > { %v1485_v18 = vpop.f32.mrf.mxu1  ;;  %v1541_v29 = vpop.f32.mrf.mxu0 }
 0x27c   : > { %v1174_v30 = vadd.f32 %v1539_v27, %v1069_v26  ;;  %v1486_v31 = vadd.f32 %v1485_v18, %v1484_v23  ;;  %v1218_v32 = vmul.f32 %v2472_v4, %v1203_v25  ;;  %v1542_v36 = vadd.f32 %v1541_v29, %v1540_v24  ;;  %v1438_v18 = vld [vmem:[#allocation2] ss:$0 sm:$0xff] }
 0x27d   : > { %v1487_v20 = vpop.f32.mrf.mxu1  ;;  %v1543_v33 = vpop.f32.mrf.mxu0 }
 0x27e   : > { %v1204_v34 = vmax.f32 %v1174_v30, 0.0  ;;  %v1074_v35 = vadd.f32 %v1486_v31, %v2466_v14  ;;  %v1229_v37 = vsel %vm1225_vm1, %v1218_v32, 0.0 }
 0x27f   : > { %v1488_v21 = vpop.f32.mrf.mxu1  ;;  %v1544_v38 = vpop.f32.mrf.mxu0  ;;  %1230 = vadd.xlane.f32.xlu0 %v1229_v37 }
 0x280   : > { %v1179_v39 = vadd.f32 %v1542_v36, %v1074_v35  ;;  %v1489_v22 = vadd.f32 %v1488_v21, %v1487_v20  ;;  %v1219_v40 = vmul.f32 %v2472_v4, %v1204_v34  ;;  %v1545_v45 = vadd.f32 %v1544_v38, %v1543_v33 }
 0x281   : > { %v1490_v41 = vpop.f32.mrf.mxu1  ;;  %v1546_v42 = vpop.f32.mrf.mxu0 }
 0x282   : > { %v1205_v43 = vmax.f32 %v1179_v39, 0.0  ;;  %v1079_v44 = vadd.f32 %v1489_v22, %v2466_v14  ;;  %v1232_v46 = vsel %vm1225_vm1, %v1219_v40, 0.0 }
 0x283   : > { %v1491_v47 = vpop.f32.mrf.mxu1  ;;  %v1547_v48 = vpop.f32.mrf.mxu0  ;;  %1233 = vadd.xlane.f32.xlu1 %v1232_v46 }
 0x284   : > { %v1184_v49 = vadd.f32 %v1545_v45, %v1079_v44  ;;  %v1492_v50 = vadd.f32 %v1491_v47, %v1490_v41  ;;  %v1220_v51 = vmul.f32 %v2472_v4, %v1205_v43  ;;  %v1548_v12 = vadd.f32 %v1547_v48, %v1546_v42 }
 0x285   : > { %v1493_v52 = vpop.f32.mrf.mxu1  ;;  %v1549_v53 = vpop.f32.mrf.mxu0  ;;  %v1298_v43 = vand.u32 127, %v349_v16 }
 0x286   : > { %v1206_v54 = vmax.f32 %v1184_v49, 0.0  ;;  %v1084_v55 = vadd.f32 %v1492_v50, %v2466_v14  ;;  %v1235_v13 = vsel %vm1225_vm1, %v1220_v51, 0.0 }
 0x287   : > { %v1494_v56 = vpop.f32.mrf.mxu1  ;;  %v1550_v57 = vpop.f32.mrf.mxu0  ;;  %1236 = vadd.xlane.f32.xlu1 %v1235_v13  ;;  %v1301_v45 = vsub.s32 %v1298_v43, %v2197_v17 }
 0x288   : > { %v1189_v58 = vadd.f32 %v1548_v12, %v1084_v55  ;;  %v1495_v59 = vadd.f32 %v1494_v56, %v1493_v52  ;;  %v1221_v60 = vmul.f32 %v2472_v4, %v1206_v54  ;;  %v1551_v1 = vadd.f32 %v1550_v57, %v1549_v53 }
 0x289   : > { %v1496_v61 = vpop.f32.mrf.mxu1  ;;  %v1552_v62 = vpop.f32.mrf.mxu0 }
 0x28a   : > { %v1207_v63 = vmax.f32 %v1189_v58, 0.0  ;;  %v1089_v0 = vadd.f32 %v1495_v59, %v2466_v14  ;;  %v1238_v2 = vsel %vm1225_vm1, %v1221_v60, 0.0 }
 0x28b   : > { %v1497_v3 = vpop.f32.mrf.mxu1  ;;  %v1553_v5 = vpop.f32.mrf.mxu0  ;;  %1239 = vadd.xlane.f32.xlu0 %v1238_v2 }
 0x28c   : > { %v1194_v6 = vadd.f32 %v1551_v1, %v1089_v0  ;;  %v1498_v7 = vadd.f32 %v1497_v3, %v1496_v61  ;;  %v1222_v8 = vmul.f32 %v2472_v4, %v1207_v63  ;;  %v1554_v11 = vadd.f32 %v1553_v5, %v1552_v62 }
 0x28e   : > { %v1208_v9 = vmax.f32 %v1194_v6, 0.0  ;;  %v1094_v10 = vadd.f32 %v1498_v7, %v2466_v14  ;;  %v1241_v19 = vsel %vm1225_vm1, %v1222_v8, 0.0 }
 0x28f   : > { %1242 = vadd.xlane.f32.xlu1 %v1241_v19 }
 0x290   : > { %v1199_v23 = vadd.f32 %v1554_v11, %v1094_v10  ;;  %v1223_v24 = vmul.f32 %v2472_v4, %v1208_v9 }
 0x292   : > { %v1209_v25 = vmax.f32 %v1199_v23, 0.0  ;;  %v1244_v26 = vsel %vm1225_vm1, %v1223_v24, 0.0 }
 0x293   : > { %1245 = vadd.xlane.f32.xlu0 %v1244_v26 }
 0x294   : > { %v1224_v27 = vmul.f32 %v2472_v4, %v1209_v25 }
 0x296   : > { %v1247_v28 = vsel %vm1225_vm1, %v1224_v27, 0.0 }
 0x297   : > { %1248 = vadd.xlane.f32.xlu1 %v1247_v28 }
 0x303   : > { %v1228_v29 = vpop.xlane.xlu0 %1227 }
 0x304   : > { %v1257_v30 = vadd.f32 %v1438_v18, %v1228_v29 }
 0x306   : > { %1274 = vperm.xlu0 %1596, %v1257_v30  }
 0x308   : > { %v1231_v14 = vpop.xlane.xlu0 %1230 }
 0x309   : > { %v1258_v31 = vadd.f32 %v1438_v18, %v1231_v14 }
 0x30b   : > { %1277 = vperm.xlu1 %1597, %v1258_v31  }
 0x30c   : > { %v1234_v32 = vpop.xlane.xlu1 %1233 }
 0x30d   : > { %v1259_v20 = vadd.f32 %v1438_v18, %v1234_v32 }
 0x30f   : > { %1280 = vperm.xlu1 %1597, %v1259_v20  }
 0x310   : > { %v1237_v33 = vpop.xlane.xlu1 %1236 }
 0x311   : > { %v1260_v34 = vadd.f32 %v1438_v18, %v1237_v33 }
 0x313   : > { %1283 = vperm.xlu1 %1597, %v1260_v34  }
 0x314   : > { %v1240_v35 = vpop.xlane.xlu0 %1239 }
 0x315   : > { %v1261_v36 = vadd.f32 %v1438_v18, %v1240_v35 }
 0x317   : > { %1286 = vperm.xlu1 %1597, %v1261_v36  }
 0x318   : > { %v1243_v4 = vpop.xlane.xlu1 %1242 }
 0x319   : > { %v1262_v37 = vadd.f32 %v1438_v18, %v1243_v4 }
 0x31b   : > { %1289 = vperm.xlu1 %1597, %v1262_v37  }
 0x31c   : > { %v1246_v21 = vpop.xlane.xlu0 %1245 }
 0x31d   : > { %v1263_v38 = vadd.f32 %v1438_v18, %v1246_v21 }
 0x31f   : > { %1292 = vperm.xlu1 %1597, %v1263_v38  }
 0x320   : > { %v1249_v39 = vpop.xlane.xlu1 %1248 }
 0x321   : > { %v1264_v22 = vadd.f32 %v1438_v18, %v1249_v39 }
 0x323   : > { %1295 = vperm.xlu1 %1597, %v1264_v22  }
 0x381   : > { %v1275_v46 = vpop.permute.xlu0 %1274 }
 0x382   : > { %v1302_v50 = vrot.slane %v1275_v46, %v1301_v45 }
 0x386   : > { %v1278_v40 = vpop.permute.xlu1 %1277 }
 0x387   : > { %v1306_v48 = vrot.slane %v1278_v40, %v1301_v45 }
 0x389   : > { %v1332_v53 = vsel %vm1331_vm2, %v1306_v48, %v1302_v50 }
 0x38a   : > { %v1281_v41 = vpop.permute.xlu1 %1280 }
 0x38b   : > { %v1310_v49 = vrot.slane %v1281_v41, %v1301_v45 }
 0x38d   : > { %v1334_v17 = vsel %vm1333_vm3, %v1310_v49, %v1332_v53 }
 0x38e   : > { %v1284_v42 = vpop.permute.xlu1 %1283 }
 0x38f   : > { %v1314_v51 = vrot.slane %v1284_v42, %v1301_v45 }
 0x391   : > { %v1336_v12 = vsel %vm1335_vm4, %v1314_v51, %v1334_v17 }
 0x392   : > { %v1287_v44 = vpop.permute.xlu1 %1286 }
 0x393   : > { %v1318_v52 = vrot.slane %v1287_v44, %v1301_v45 }
 0x395   : > { %v1338_v13 = vsel %vm1337_vm5, %v1318_v52, %v1336_v12 }
 0x396   : > { %v1290_v47 = vpop.permute.xlu1 %1289 }
 0x397   : > { %v1322_v54 = vrot.slane %v1290_v47, %v1301_v45 }
 0x399   : > { %v1340_v56 = vsel %vm1339_vm6, %v1322_v54, %v1338_v13 }
 0x39a   : > { %v1293_v16 = vpop.permute.xlu1 %1292 }
 0x39b   : > { %v1326_v55 = vrot.slane %v1293_v16, %v1301_v45 }
 0x39d   : > { %v1342_v58 = vsel %vm1341_vm7, %v1326_v55, %v1340_v56 }
 0x39e   : > { %v1296_v15 = vpop.permute.xlu1 %1295 }
 0x39f   : > { %v1330_v57 = vrot.slane %v1296_v15, %v1301_v45 }
 0x3a1   : > { %v1344_v59 = vsel %vm1343_vm8, %v1330_v57, %v1342_v58 }
 0x3a2   : > { %1347 = vst.msk [vmem:[%s328_s18] sm:$0xff] %vm1346_vm9, %v1344_v59 }
 0x3a3   : > { %1611 = shalt.err (!%p1608_p3)
}
 0x3a4   : > { %s1612_s10 = scalar_lea.hbm %s2509_s26, 128  ;;  %s1616_s17 = scalar_lea.hbm %s2555_s9, 512 }
 0x3a5   : > { %p1613_p4 = scmp.ne.s32.totalorder %s2509_s26, %s1612_s10  ;;  %p1617_p9 = scmp.lt.s32.totalorder %s2509_s26, %s2555_s9 }
 0x3a6   : > { %p1618_p10 = scmp.lt.s32.totalorder %s1616_s17, %s1612_s10 }
 0x3a7   : > { %p1614_p7 = pnand %p1613_p4, %p1754_p5 }
 0x3a8   : > { %p1619_p11 = por %p1618_p10, %p1617_p9 }
 0x3a9   : > { %p1615_p8 = pneg %p1614_p7 }
 0x3ab   : > { %p1620_p12 = pnand %p1619_p11, %p1615_p8 }
 0x3ad   : > { %1623 = shalt.err (!%p1620_p12)
}
 0x3ae   : > { %1555 = dma.vmem_to_hbm [thread:$0]  (%p1754_p5), %s1363_s22, 128, %s2509_s26, %s1349_s8  }
 0x3af PF: > { %p1561_p13 = scmp.ge.s32.totalorder %s1658_s14, 2  ;;  %s1374_s24 = sand.u32 1, %s1646_s11  }
 0x3b0   : > { %s1375_s27 = scalar_lea.sflag [#allocation4], %s1374_s24 }
 0x3b1   : > { %p1558_p0 = pnand %p1561_p13, %p1758_p6 }
 0x3b3   : > { %p1559_p1 = pneg %p1558_p0 }
 0x3b5   : > { %1641 = dma.done.wait (%p1559_p1), %s1375_s27, 128  }
 0x3b6   : > { %1643 = vsyncadd (%p1559_p1), %s1375_s27, 4294967168  ;;  %p21_p2 = scmp.ge.s32.totalorder %s1741_s16, 6   ;;  %s2558_s11 = smov %s1650_s12 }
 0x3b7   : > { %s2559_s12 = smov %s1654_s13  ;;  %s2560_s13 = smov %s1752_s19 }
 0x3b8   : > { %s2561_s14 = smov %s1741_s16  ;;  %23 = sbr.rel (!%p21_p2) target bundleno = 6 (0x6), region = 91 }
 0x3bd   :  { %1380 = vsyncpa [#allocation4], 1 }
 0x3be   :  { %1382 = vsyncpa [#allocation4 + $0x1], 1 }

</bundles_post_ra>
